<compile_context>
chip_gen: v6e
topology: v6e:2x2x1
jax: 0.10.0
libtpu: 0.0.40
codegen_flags: <defaults>
</compile_context>

<pallas_src>
import jax
import jax.numpy as jnp
from jax.experimental import pallas as pl
from jax.experimental.pallas import tpu as pltpu

FEATURE_DIM = 128
HIDDEN_DIMS = [128, 128, 128, 128, 8]
BN_EPS = 1e-5
LANE = 128
SUBLANE = 8


def _ae_kernel(x_ref, w_ref, b_ref, out_ref):
    """Whole 10-layer chain h = relu(h @ W[l] + b[l]) on one row tile.

    All (zero-padded, lane-dense 128x128) weights are stacked into one
    VMEM-resident (L,128,128) bf16 ref; matmul operands are bf16 (MXU fast
    path) with f32 accumulation; bias + ReLU run in f32 on the VPU; the
    intermediate h is stored back as bf16 to halve VMEM load/store traffic.
    """
    n_layers = w_ref.shape[0]
    h = x_ref[...].astype(jnp.bfloat16)
    for l in range(n_layers):  # static unroll over the 10 layers
        acc = jnp.dot(h, w_ref[l], preferred_element_type=jnp.float32)
        acc = jnp.maximum(acc + b_ref[l], 0.0)
        if l + 1 < n_layers:
            h = acc.astype(jnp.bfloat16)
        else:
            out_ref[...] = acc.astype(out_ref.dtype)


def _prepare_params(weights, biases, *, weight_dtype=jnp.bfloat16):
    """Zero-pad every layer to lane-dense (128,128)/(1,128), cast, and stack.

    Padding is numerically exact: padded output lanes see zero weight columns
    and zero bias (ReLU(0)=0), and padded input rows of the next weight are 0.
    """
    pw, pb = [], []
    for w, b in zip(weights, biases):
        d_in, d_out = w.shape
        pw.append(jnp.pad(w, ((0, LANE - d_in), (0, LANE - d_out))).astype(weight_dtype))
        b2 = jnp.asarray(b, jnp.float32).reshape(1, -1)
        pb.append(jnp.pad(b2, ((0, 0), (0, LANE - b2.shape[1]))))
    return jnp.stack(pw), jnp.stack(pb)  # (L,128,128) bf16, (L,1,128) f32


def autoencoder_forward(x, weights, biases, *, tile_m=1024):
    """x: (N, 1, H, 128). Returns (N, 1, H, 128) in x.dtype."""
    N, C, H, F = x.shape
    assert F == FEATURE_DIM, f"feature_dim must be {FEATURE_DIM}, got {F}"
    M = N * C * H
    out_dim = weights[-1].shape[1]

    W, B = _prepare_params(weights, biases)
    n_layers = int(W.shape[0])

    x2 = x.reshape(M, F)  # no dtype cast: bf16 input is consumed as-is

    # Tiny-input path only: keep the row tile at least one sublane group tall.
    M_k = M
    if M < SUBLANE:
        x2 = jnp.pad(x2, ((0, SUBLANE - M), (0, 0)))
        M_k = SUBLANE

    # Row tiling: shrink the tile for small inputs, and cap it so there are at
    # least two grid steps whenever M allows (v7x has 2 TensorCores; the grid
    # axis below is marked "parallel").  Ragged M is handled by Pallas's
    # partial last tile (masked write-back), no host pad/slice needed.
    m_aligned = pl.cdiv(M_k, SUBLANE) * SUBLANE
    tile_m = max(SUBLANE, min(tile_m, m_aligned))
    if m_aligned >= 2 * SUBLANE:
        half = pl.cdiv(pl.cdiv(m_aligned, 2), SUBLANE) * SUBLANE
        tile_m = min(tile_m, half)
    grid_m = pl.cdiv(M_k, tile_m)

    in_specs = [
        pl.BlockSpec((tile_m, F), lambda i: (i, 0)),
        # Constant-index whole-array blocks: DMA'd once, resident across steps.
        pl.BlockSpec(tuple(W.shape), lambda i: (0, 0, 0)),
        pl.BlockSpec(tuple(B.shape), lambda i: (0, 0, 0)),
    ]

    flops = 2 * grid_m * tile_m * n_layers * LANE * LANE
    bytes_accessed = (
        M_k * F * x2.dtype.itemsize + M_k * LANE * x.dtype.itemsize
        + int(W.size) * W.dtype.itemsize + int(B.size) * B.dtype.itemsize)

    out = pl.pallas_call(
        _ae_kernel,
        out_shape=jax.ShapeDtypeStruct((M_k, LANE), x.dtype),
        grid_spec=pltpu.PrefetchScalarGridSpec(
            num_scalar_prefetch=0,
            grid=(grid_m,),
            in_specs=in_specs,
            out_specs=pl.BlockSpec((tile_m, LANE), lambda i: (i, 0)),
        ),
        compiler_params=pltpu.CompilerParams(
            dimension_semantics=("parallel",)),
        cost_estimate=pl.CostEstimate(
            flops=flops, transcendentals=0, bytes_accessed=bytes_accessed),
    )(x2, W, B)

    if M_k != M:
        out = out[:M]
    if out_dim != LANE:
        out = out[:, :out_dim]
    return out.reshape(N, C, H, out_dim)


def init_params(key):
    """Deterministic parameter init matching the module's weight_init():
    kaiming_uniform_(nonlinearity='relu') for Linear weights, normal for bias.
    Eval-mode BatchNorm2d(1) is folded in (scale = 1/sqrt(1 + eps))."""
    dims = [FEATURE_DIM] + HIDDEN_DIMS
    n = len(dims) - 1
    enc_pairs = [(dims[i], dims[i + 1]) for i in range(n)]
    dec_pairs = [(dims[i + 1], dims[i]) for i in reversed(range(n))]
    layer_dims = enc_pairs + dec_pairs

    bn_scale = 1.0 / float(jnp.sqrt(1.0 + BN_EPS))
    weights, biases = [], []
    for (fan_in, fan_out) in layer_dims:
        key, kw, kb = jax.random.split(key, 3)
        bound = (6.0 / fan_in) ** 0.5  # kaiming_uniform with relu gain
        w = jax.random.uniform(kw, (fan_out, fan_in), jnp.float32, -bound, bound)
        b = jax.random.normal(kb, (fan_out,), jnp.float32)
        # Fold BN (mean=0, var=1, gamma=1, beta=0): y = bn_scale*(xW^T + b)
        weights.append(jnp.asarray(w.T * bn_scale))          # (in, out)
        biases.append(jnp.asarray((b * bn_scale)[None, :]))  # (1, out)
    return weights, biases


def _reference(x, weights, biases):
    """Plain-JAX reference mirroring the kernel's bf16-intermediate / f32-accum math."""
    N, C, H, F = x.shape
    n = len(weights)
    h = x.reshape(-1, F).astype(jnp.bfloat16)
    for i, (w, b) in enumerate(zip(weights, biases)):
        acc = jnp.dot(h, w.astype(jnp.bfloat16), preferred_element_type=jnp.float32)
        acc = jnp.maximum(acc + jnp.asarray(b, jnp.float32).reshape(1, -1), 0.0)
        h = acc.astype(jnp.bfloat16) if i + 1 < n else acc
    return h.astype(x.dtype).reshape(N, C, H, -1)


if __name__ == "__main__":
    key = jax.random.PRNGKey(0)
    kx, kx2, kp = jax.random.split(key, 3)
    weights, biases = init_params(kp)

    # (N, C=1, H, feature_dim=128) as the module expects.  M = 16 rows -> two
    # 8-row tiles (exercises the multi-step / dual-TensorCore grid path).
    x = jax.random.normal(kx, (2, 1, 8, FEATURE_DIM), dtype=jnp.float32)
    y = autoencoder_forward(x, weights, biases)
    jax.block_until_ready(y)
    assert y.shape == x.shape, (y.shape, x.shape)
    y_ref = _reference(x, weights, biases)
    assert jnp.allclose(y, y_ref, atol=2e-2, rtol=2e-2)

    # Ragged row count (M = 12): last row tile is partial and handled in-kernel
    # (no host-side pad / slice round trips).
    x_odd = jax.random.normal(kx2, (1, 1, 12, FEATURE_DIM), dtype=jnp.float32)
    y_odd = autoencoder_forward(x_odd, weights, biases)
    jax.block_until_ready(y_odd)
    assert y_odd.shape == x_odd.shape, (y_odd.shape, x_odd.shape)
    y_odd_ref = _reference(x_odd, weights, biases)
    assert jnp.allclose(y_odd, y_odd_ref, atol=2e-2, rtol=2e-2)

    # bf16 input/output path (no wrapper cast; numerically equivalent since the
    # kernel rounds x to bf16 before the first matmul anyway).
    x_bf = x.astype(jnp.bfloat16)
    y_bf = autoencoder_forward(x_bf, weights, biases)
    jax.block_until_ready(y_bf)
    assert y_bf.dtype == jnp.bfloat16 and y_bf.shape == x.shape
    assert jnp.allclose(y_bf.astype(jnp.float32), y_ref, atol=5e-2, rtol=5e-2)

    print("KERNEL_OK")
</pallas_src>

<mosaic_0001>
module attributes {stable_mosaic.version = 11 : i64} {
  func.func @_ae_kernel(%arg0: i32, %arg1: memref<8x128xf32, #tpu.memory_space<vmem>>, %arg2: memref<10x128x128xbf16, #tpu.memory_space<vmem>>, %arg3: memref<10x1x128xf32, #tpu.memory_space<vmem>>, %arg4: memref<8x128xf32, #tpu.memory_space<vmem>>) attributes {dimension_semantics = [#tpu.dimension_semantics<parallel>], iteration_bounds = array<i64: 2>, scalar_prefetch = 0 : i64, scratch_operands = 0 : i64, tpu.core_type = #tpu.core_type<tc>, window_params = [{transform_indices = @transform_0, window_bounds = array<i64: 8, 128>}, {pipeline_mode = #tpu.pipeline_mode<synchronous>, transform_indices = @transform_1, window_bounds = array<i64: 10, 128, 128>}, {pipeline_mode = #tpu.pipeline_mode<synchronous>, transform_indices = @transform_2, window_bounds = array<i64: 10, 1, 128>}, {transform_indices = @transform_3, window_bounds = array<i64: 8, 128>}]} {
    %c0 = arith.constant 0 : index
    %c0_0 = arith.constant 0 : index
    %0 = vector.load %arg1[%c0, %c0_0] : memref<8x128xf32, #tpu.memory_space<vmem>>, vector<8x128xf32>
    %1 = arith.truncf %0 : vector<8x128xf32> to vector<8x128xbf16>
    %c0_1 = arith.constant 0 : index
    %c0_2 = arith.constant 0 : index
    %c0_3 = arith.constant 0 : index
    %2 = vector.load %arg2[%c0_1, %c0_2, %c0_3] : memref<10x128x128xbf16, #tpu.memory_space<vmem>>, vector<1x128x128xbf16>
    %3 = vector.shape_cast %2 : vector<1x128x128xbf16> to vector<128x128xbf16>
    %cst = arith.constant dense<0.000000e+00> : vector<8x128xf32>
    %4 = tpu.matmul %1, %3, %cst {dimension_numbers = #tpu.dot_dimension_numbers<[1], [0], [0], [1], [0, 0, 1, 1], [], []>} : vector<8x128xbf16>, vector<128x128xbf16>, vector<8x128xf32> -> vector<8x128xf32>
    %c0_4 = arith.constant 0 : index
    %c0_5 = arith.constant 0 : index
    %c0_6 = arith.constant 0 : index
    %5 = vector.load %arg3[%c0_4, %c0_5, %c0_6] : memref<10x1x128xf32, #tpu.memory_space<vmem>>, vector<1x1x128xf32>
    %6 = vector.shape_cast %5 : vector<1x1x128xf32> to vector<1x128xf32>
    %7 = vector.broadcast %6 : vector<1x128xf32> to vector<8x128xf32>
    %8 = arith.addf %4, %7 : vector<8x128xf32>
    %cst_7 = arith.constant 0.000000e+00 : f32
    %9 = vector.broadcast %cst_7 : f32 to vector<8x128xf32>
    %10 = arith.maximumf %8, %9 : vector<8x128xf32>
    %11 = arith.truncf %10 : vector<8x128xf32> to vector<8x128xbf16>
    %c1 = arith.constant 1 : index
    %c0_8 = arith.constant 0 : index
    %c0_9 = arith.constant 0 : index
    %12 = vector.load %arg2[%c1, %c0_8, %c0_9] : memref<10x128x128xbf16, #tpu.memory_space<vmem>>, vector<1x128x128xbf16>
    %13 = vector.shape_cast %12 : vector<1x128x128xbf16> to vector<128x128xbf16>
    %cst_10 = arith.constant dense<0.000000e+00> : vector<8x128xf32>
    %14 = tpu.matmul %11, %13, %cst_10 {dimension_numbers = #tpu.dot_dimension_numbers<[1], [0], [0], [1], [0, 0, 1, 1], [], []>} : vector<8x128xbf16>, vector<128x128xbf16>, vector<8x128xf32> -> vector<8x128xf32>
    %c1_11 = arith.constant 1 : index
    %c0_12 = arith.constant 0 : index
    %c0_13 = arith.constant 0 : index
    %15 = vector.load %arg3[%c1_11, %c0_12, %c0_13] : memref<10x1x128xf32, #tpu.memory_space<vmem>>, vector<1x1x128xf32>
    %16 = vector.shape_cast %15 : vector<1x1x128xf32> to vector<1x128xf32>
    %17 = vector.broadcast %16 : vector<1x128xf32> to vector<8x128xf32>
    %18 = arith.addf %14, %17 : vector<8x128xf32>
    %cst_14 = arith.constant 0.000000e+00 : f32
    %19 = vector.broadcast %cst_14 : f32 to vector<8x128xf32>
    %20 = arith.maximumf %18, %19 : vector<8x128xf32>
    %21 = arith.truncf %20 : vector<8x128xf32> to vector<8x128xbf16>
    %c2 = arith.constant 2 : index
    %c0_15 = arith.constant 0 : index
    %c0_16 = arith.constant 0 : index
    %22 = vector.load %arg2[%c2, %c0_15, %c0_16] : memref<10x128x128xbf16, #tpu.memory_space<vmem>>, vector<1x128x128xbf16>
    %23 = vector.shape_cast %22 : vector<1x128x128xbf16> to vector<128x128xbf16>
    %cst_17 = arith.constant dense<0.000000e+00> : vector<8x128xf32>
    %24 = tpu.matmul %21, %23, %cst_17 {dimension_numbers = #tpu.dot_dimension_numbers<[1], [0], [0], [1], [0, 0, 1, 1], [], []>} : vector<8x128xbf16>, vector<128x128xbf16>, vector<8x128xf32> -> vector<8x128xf32>
    %c2_18 = arith.constant 2 : index
    %c0_19 = arith.constant 0 : index
    %c0_20 = arith.constant 0 : index
    %25 = vector.load %arg3[%c2_18, %c0_19, %c0_20] : memref<10x1x128xf32, #tpu.memory_space<vmem>>, vector<1x1x128xf32>
    %26 = vector.shape_cast %25 : vector<1x1x128xf32> to vector<1x128xf32>
    %27 = vector.broadcast %26 : vector<1x128xf32> to vector<8x128xf32>
    %28 = arith.addf %24, %27 : vector<8x128xf32>
    %cst_21 = arith.constant 0.000000e+00 : f32
    %29 = vector.broadcast %cst_21 : f32 to vector<8x128xf32>
    %30 = arith.maximumf %28, %29 : vector<8x128xf32>
    %31 = arith.truncf %30 : vector<8x128xf32> to vector<8x128xbf16>
    %c3 = arith.constant 3 : index
    %c0_22 = arith.constant 0 : index
    %c0_23 = arith.constant 0 : index
    %32 = vector.load %arg2[%c3, %c0_22, %c0_23] : memref<10x128x128xbf16, #tpu.memory_space<vmem>>, vector<1x128x128xbf16>
    %33 = vector.shape_cast %32 : vector<1x128x128xbf16> to vector<128x128xbf16>
    %cst_24 = arith.constant dense<0.000000e+00> : vector<8x128xf32>
    %34 = tpu.matmul %31, %33, %cst_24 {dimension_numbers = #tpu.dot_dimension_numbers<[1], [0], [0], [1], [0, 0, 1, 1], [], []>} : vector<8x128xbf16>, vector<128x128xbf16>, vector<8x128xf32> -> vector<8x128xf32>
    %c3_25 = arith.constant 3 : index
    %c0_26 = arith.constant 0 : index
    %c0_27 = arith.constant 0 : index
    %35 = vector.load %arg3[%c3_25, %c0_26, %c0_27] : memref<10x1x128xf32, #tpu.memory_space<vmem>>, vector<1x1x128xf32>
    %36 = vector.shape_cast %35 : vector<1x1x128xf32> to vector<1x128xf32>
    %37 = vector.broadcast %36 : vector<1x128xf32> to vector<8x128xf32>
    %38 = arith.addf %34, %37 : vector<8x128xf32>
    %cst_28 = arith.constant 0.000000e+00 : f32
    %39 = vector.broadcast %cst_28 : f32 to vector<8x128xf32>
    %40 = arith.maximumf %38, %39 : vector<8x128xf32>
    %41 = arith.truncf %40 : vector<8x128xf32> to vector<8x128xbf16>
    %c4 = arith.constant 4 : index
    %c0_29 = arith.constant 0 : index
    %c0_30 = arith.constant 0 : index
    %42 = vector.load %arg2[%c4, %c0_29, %c0_30] : memref<10x128x128xbf16, #tpu.memory_space<vmem>>, vector<1x128x128xbf16>
    %43 = vector.shape_cast %42 : vector<1x128x128xbf16> to vector<128x128xbf16>
    %cst_31 = arith.constant dense<0.000000e+00> : vector<8x128xf32>
    %44 = tpu.matmul %41, %43, %cst_31 {dimension_numbers = #tpu.dot_dimension_numbers<[1], [0], [0], [1], [0, 0, 1, 1], [], []>} : vector<8x128xbf16>, vector<128x128xbf16>, vector<8x128xf32> -> vector<8x128xf32>
    %c4_32 = arith.constant 4 : index
    %c0_33 = arith.constant 0 : index
    %c0_34 = arith.constant 0 : index
    %45 = vector.load %arg3[%c4_32, %c0_33, %c0_34] : memref<10x1x128xf32, #tpu.memory_space<vmem>>, vector<1x1x128xf32>
    %46 = vector.shape_cast %45 : vector<1x1x128xf32> to vector<1x128xf32>
    %47 = vector.broadcast %46 : vector<1x128xf32> to vector<8x128xf32>
    %48 = arith.addf %44, %47 : vector<8x128xf32>
    %cst_35 = arith.constant 0.000000e+00 : f32
    %49 = vector.broadcast %cst_35 : f32 to vector<8x128xf32>
    %50 = arith.maximumf %48, %49 : vector<8x128xf32>
    %51 = arith.truncf %50 : vector<8x128xf32> to vector<8x128xbf16>
    %c5 = arith.constant 5 : index
    %c0_36 = arith.constant 0 : index
    %c0_37 = arith.constant 0 : index
    %52 = vector.load %arg2[%c5, %c0_36, %c0_37] : memref<10x128x128xbf16, #tpu.memory_space<vmem>>, vector<1x128x128xbf16>
    %53 = vector.shape_cast %52 : vector<1x128x128xbf16> to vector<128x128xbf16>
    %cst_38 = arith.constant dense<0.000000e+00> : vector<8x128xf32>
    %54 = tpu.matmul %51, %53, %cst_38 {dimension_numbers = #tpu.dot_dimension_numbers<[1], [0], [0], [1], [0, 0, 1, 1], [], []>} : vector<8x128xbf16>, vector<128x128xbf16>, vector<8x128xf32> -> vector<8x128xf32>
    %c5_39 = arith.constant 5 : index
    %c0_40 = arith.constant 0 : index
    %c0_41 = arith.constant 0 : index
    %55 = vector.load %arg3[%c5_39, %c0_40, %c0_41] : memref<10x1x128xf32, #tpu.memory_space<vmem>>, vector<1x1x128xf32>
    %56 = vector.shape_cast %55 : vector<1x1x128xf32> to vector<1x128xf32>
    %57 = vector.broadcast %56 : vector<1x128xf32> to vector<8x128xf32>
    %58 = arith.addf %54, %57 : vector<8x128xf32>
    %cst_42 = arith.constant 0.000000e+00 : f32
    %59 = vector.broadcast %cst_42 : f32 to vector<8x128xf32>
    %60 = arith.maximumf %58, %59 : vector<8x128xf32>
    %61 = arith.truncf %60 : vector<8x128xf32> to vector<8x128xbf16>
    %c6 = arith.constant 6 : index
    %c0_43 = arith.constant 0 : index
    %c0_44 = arith.constant 0 : index
    %62 = vector.load %arg2[%c6, %c0_43, %c0_44] : memref<10x128x128xbf16, #tpu.memory_space<vmem>>, vector<1x128x128xbf16>
    %63 = vector.shape_cast %62 : vector<1x128x128xbf16> to vector<128x128xbf16>
    %cst_45 = arith.constant dense<0.000000e+00> : vector<8x128xf32>
    %64 = tpu.matmul %61, %63, %cst_45 {dimension_numbers = #tpu.dot_dimension_numbers<[1], [0], [0], [1], [0, 0, 1, 1], [], []>} : vector<8x128xbf16>, vector<128x128xbf16>, vector<8x128xf32> -> vector<8x128xf32>
    %c6_46 = arith.constant 6 : index
    %c0_47 = arith.constant 0 : index
    %c0_48 = arith.constant 0 : index
    %65 = vector.load %arg3[%c6_46, %c0_47, %c0_48] : memref<10x1x128xf32, #tpu.memory_space<vmem>>, vector<1x1x128xf32>
    %66 = vector.shape_cast %65 : vector<1x1x128xf32> to vector<1x128xf32>
    %67 = vector.broadcast %66 : vector<1x128xf32> to vector<8x128xf32>
    %68 = arith.addf %64, %67 : vector<8x128xf32>
    %cst_49 = arith.constant 0.000000e+00 : f32
    %69 = vector.broadcast %cst_49 : f32 to vector<8x128xf32>
    %70 = arith.maximumf %68, %69 : vector<8x128xf32>
    %71 = arith.truncf %70 : vector<8x128xf32> to vector<8x128xbf16>
    %c7 = arith.constant 7 : index
    %c0_50 = arith.constant 0 : index
    %c0_51 = arith.constant 0 : index
    %72 = vector.load %arg2[%c7, %c0_50, %c0_51] : memref<10x128x128xbf16, #tpu.memory_space<vmem>>, vector<1x128x128xbf16>
    %73 = vector.shape_cast %72 : vector<1x128x128xbf16> to vector<128x128xbf16>
    %cst_52 = arith.constant dense<0.000000e+00> : vector<8x128xf32>
    %74 = tpu.matmul %71, %73, %cst_52 {dimension_numbers = #tpu.dot_dimension_numbers<[1], [0], [0], [1], [0, 0, 1, 1], [], []>} : vector<8x128xbf16>, vector<128x128xbf16>, vector<8x128xf32> -> vector<8x128xf32>
    %c7_53 = arith.constant 7 : index
    %c0_54 = arith.constant 0 : index
    %c0_55 = arith.constant 0 : index
    %75 = vector.load %arg3[%c7_53, %c0_54, %c0_55] : memref<10x1x128xf32, #tpu.memory_space<vmem>>, vector<1x1x128xf32>
    %76 = vector.shape_cast %75 : vector<1x1x128xf32> to vector<1x128xf32>
    %77 = vector.broadcast %76 : vector<1x128xf32> to vector<8x128xf32>
    %78 = arith.addf %74, %77 : vector<8x128xf32>
    %cst_56 = arith.constant 0.000000e+00 : f32
    %79 = vector.broadcast %cst_56 : f32 to vector<8x128xf32>
    %80 = arith.maximumf %78, %79 : vector<8x128xf32>
    %81 = arith.truncf %80 : vector<8x128xf32> to vector<8x128xbf16>
    %c8 = arith.constant 8 : index
    %c0_57 = arith.constant 0 : index
    %c0_58 = arith.constant 0 : index
    %82 = vector.load %arg2[%c8, %c0_57, %c0_58] : memref<10x128x128xbf16, #tpu.memory_space<vmem>>, vector<1x128x128xbf16>
    %83 = vector.shape_cast %82 : vector<1x128x128xbf16> to vector<128x128xbf16>
    %cst_59 = arith.constant dense<0.000000e+00> : vector<8x128xf32>
    %84 = tpu.matmul %81, %83, %cst_59 {dimension_numbers = #tpu.dot_dimension_numbers<[1], [0], [0], [1], [0, 0, 1, 1], [], []>} : vector<8x128xbf16>, vector<128x128xbf16>, vector<8x128xf32> -> vector<8x128xf32>
    %c8_60 = arith.constant 8 : index
    %c0_61 = arith.constant 0 : index
    %c0_62 = arith.constant 0 : index
    %85 = vector.load %arg3[%c8_60, %c0_61, %c0_62] : memref<10x1x128xf32, #tpu.memory_space<vmem>>, vector<1x1x128xf32>
    %86 = vector.shape_cast %85 : vector<1x1x128xf32> to vector<1x128xf32>
    %87 = vector.broadcast %86 : vector<1x128xf32> to vector<8x128xf32>
    %88 = arith.addf %84, %87 : vector<8x128xf32>
    %cst_63 = arith.constant 0.000000e+00 : f32
    %89 = vector.broadcast %cst_63 : f32 to vector<8x128xf32>
    %90 = arith.maximumf %88, %89 : vector<8x128xf32>
    %91 = arith.truncf %90 : vector<8x128xf32> to vector<8x128xbf16>
    %c9 = arith.constant 9 : index
    %c0_64 = arith.constant 0 : index
    %c0_65 = arith.constant 0 : index
    %92 = vector.load %arg2[%c9, %c0_64, %c0_65] : memref<10x128x128xbf16, #tpu.memory_space<vmem>>, vector<1x128x128xbf16>
    %93 = vector.shape_cast %92 : vector<1x128x128xbf16> to vector<128x128xbf16>
    %cst_66 = arith.constant dense<0.000000e+00> : vector<8x128xf32>
    %94 = tpu.matmul %91, %93, %cst_66 {dimension_numbers = #tpu.dot_dimension_numbers<[1], [0], [0], [1], [0, 0, 1, 1], [], []>} : vector<8x128xbf16>, vector<128x128xbf16>, vector<8x128xf32> -> vector<8x128xf32>
    %c9_67 = arith.constant 9 : index
    %c0_68 = arith.constant 0 : index
    %c0_69 = arith.constant 0 : index
    %95 = vector.load %arg3[%c9_67, %c0_68, %c0_69] : memref<10x1x128xf32, #tpu.memory_space<vmem>>, vector<1x1x128xf32>
    %96 = vector.shape_cast %95 : vector<1x1x128xf32> to vector<1x128xf32>
    %97 = vector.broadcast %96 : vector<1x128xf32> to vector<8x128xf32>
    %98 = arith.addf %94, %97 : vector<8x128xf32>
    %cst_70 = arith.constant 0.000000e+00 : f32
    %99 = vector.broadcast %cst_70 : f32 to vector<8x128xf32>
    %100 = arith.maximumf %98, %99 : vector<8x128xf32>
    %c0_71 = arith.constant 0 : index
    %c0_72 = arith.constant 0 : index
    %101 = vector.load %arg4[%c0_71, %c0_72] : memref<8x128xf32, #tpu.memory_space<vmem>>, vector<8x128xf32>
    tpu.vector_store %arg4[%c0_71, %c0_72], %100 {strides = array<i32>} : memref<8x128xf32, #tpu.memory_space<vmem>>, vector<8x128xf32>,
    return
  }
  func.func @transform_0(%arg0: i32) -> (i32, i32) {
    %c0_i32 = arith.constant 0 : i32
    %c0_i32_0 = arith.constant 0 : i32
    return %arg0, %c0_i32 : i32, i32
  }
  func.func @transform_1(%arg0: i32) -> (i32, i32, i32) {
    %c0_i32 = arith.constant 0 : i32
    %c0_i32_0 = arith.constant 0 : i32
    %c0_i32_1 = arith.constant 0 : i32
    %c0_i32_2 = arith.constant 0 : i32
    return %c0_i32, %c0_i32_0, %c0_i32_1 : i32, i32, i32
  }
  func.func @transform_2(%arg0: i32) -> (i32, i32, i32) {
    %c0_i32 = arith.constant 0 : i32
    %c0_i32_0 = arith.constant 0 : i32
    %c0_i32_1 = arith.constant 0 : i32
    %c0_i32_2 = arith.constant 0 : i32
    return %c0_i32, %c0_i32_0, %c0_i32_1 : i32, i32, i32
  }
  func.func @transform_3(%arg0: i32) -> (i32, i32) {
    %c0_i32 = arith.constant 0 : i32
    %c0_i32_0 = arith.constant 0 : i32
    return %arg0, %c0_i32 : i32, i32
  }
}

</mosaic_0001>

<bundles_post_ra>
// kernel: tpu_custom_call.1
= control target key start
LH: loop header
LB: loop body
LE: loop exit
PB: predicated region body
PF: predicated region fallthrough
CT: control target
= control target key end

     0   :  { %8 = vsyncpa [#allocation3], 0  ;;  %s2482_s0 = inlined_call_operand.hbm [shape: f32[16,128], index: 0, kind: input, shape index: {}]   ;;  %s2483_s1 = inlined_call_operand.hbm [shape: bf16[10,128,128], index: 1, kind: input, shape index: {}]   ;;  %s2484_s2 = inlined_call_operand.hbm [shape: f32[10,1,128], index: 2, kind: input, shape index: {}]   ;;  %s2485_s3 = inlined_call_operand.hbm [shape: f32[16,128], index: 3, kind: output, shape index: {}]  }
   0x1   :  { %10 = vsyncpa [#allocation3 + $0x1], 0 }
   0x2   :  { %11 = vsyncpa [#allocation6], 0 }
   0x3   :  { %12 = vsyncpa [#allocation4], 0 }
   0x4   :  { %14 = vsyncpa [#allocation4 + $0x1], 0  ;;  %s2198_s12 = smov 0   ;;  %s2200_s13 = smov 0  }
   0x5   :  { %s2202_s14 = smov 0   ;;  %s2204_s15 = smov 0  }
   0x6 LB: > { %s2219_s16 = sadd.s32 4294967295, %s2166_s15   ;;  %s1469_s17 = sadd.s32 4294967294, %s2166_s15   ;;  %s2166_s15 = sphi %s2204_s15, %s2507_s15   ;;  %s2162_s14 = sphi %s2202_s14, %s2506_s14   ;;  %s2158_s13 = sphi %s2200_s13, %s2505_s13   ;;  %s2154_s12 = sphi %s2198_s12, %s2504_s12  }
   0x7   : > { %p40_p0 = scmp.ne.s32.totalorder %s2158_s13, %s2154_s12  ;;  %p2486_p1 = scmp.eq.s32.totalorder %s2219_s16, 0 }
   0x8   : > { %p112_p3 = scmp.eq.s32.totalorder %s1469_s17, 1  ;;  %p1470_p5 = scmp.ge.s32.totalorder %s2166_s15, 1 }
   0x9   : > { %p2228_p4 = por %p2486_p1, %p40_p0  ;;  %p119_p7 = scmp.lt.s32.totalorder %s2166_s15, 3 }
   0xa   : > { %p2233_p6 = por %p112_p3, %p40_p0  ;;  %s2168_s21 = smov [#allocation5]  }
   0xb   : > { %s2490_s18 = scalar_select %p2228_p4, 1, 0 }
   0xc   : > { %s2491_s19 = scalar_select %p2233_p6, 1, 0 }
   0xd   : > { %p2238_p8 = pnand %p1470_p5, %p119_p7  ;;  %s131_s22 = sshll.u32 %s2168_s21, 4  ;;  %s132_s22 = int_to_ptr.vmem [resolvable:$true] %s131_s22 }
   0xe   : > { %s2169_s24 = smov [#allocation7]   ;;  %s2029_s26 = scalar_lea.vmem %s132_s22, 10240 }
   0xf   : > { %s2492_s20 = scalar_select %p2238_p8, 1, 0 }
  0x10   : > { %p1877_p9 = pneg %p2238_p8  ;;  %s144_s25 = sshll.u32 %s2169_s24, 4  ;;  %s145_s25 = int_to_ptr.vmem [resolvable:$true] %s144_s25 }
  0x11   : > { %p2030_p13 = scmp.ne.s32.totalorder %s132_s22, %s2029_s26  ;;  %p2037_p5 = scmp.lt.s32.totalorder %s132_s22, %s132_s22 }
  0x12   : > { %p2247_p11 = pnand %p1877_p9, %p2486_p1  ;;  %p2038_p7 = scmp.lt.s32.totalorder %s2029_s26, %s2029_s26 }
  0x14   : > { %p2020_p12 = pneg %p2247_p11  ;;  %p2039_p10 = por %p2038_p7, %p2037_p5 }
  0x16   : > { %p2032_p0 = pnand %p2030_p13, %p2020_p12 }
  0x18   : > { %p2033_p3 = pneg %p2032_p0 }
  0x1a   : > { %p2040_p9 = pnand %p2039_p10, %p2033_p3 }
  0x1c   : > { %2043 = shalt.err (!%p2040_p9)
}
  0x1d   : > { %s2170_s27 = smov 64   ;;  %s2171_s28 = smov 4  }
  0x1e   : > { %1880 = dma.hbm_to_vmem [thread:$0]  (!%p2247_p11), %s2483_s1, 10240, %s132_s22, [#allocation6], %s2170_s27, %s2170_s27, %s2171_s28  }
  0x1f   : > { %s2055_s4 = scalar_lea.vmem %s145_s25, 160  ;;  %p2063_p2 = scmp.lt.s32.totalorder %s145_s25, %s145_s25 }
  0x20   : > { %p2056_p1 = scmp.ne.s32.totalorder %s145_s25, %s2055_s4  ;;  %p2064_p6 = scmp.lt.s32.totalorder %s2055_s4, %s2055_s4 }
  0x22   : > { %p2058_p13 = pnand %p2056_p1, %p2020_p12  ;;  %p2065_p5 = por %p2064_p6, %p2063_p2 }
  0x24   : > { %p2059_p0 = pneg %p2058_p13 }
  0x26   : > { %p2066_p10 = pnand %p2065_p5, %p2059_p0 }
  0x28   : > { %2069 = shalt.err (!%p2066_p10)
}
  0x29   : > { %s2172_s5 = smov 16   ;;  %s2173_s6 = smov 1  }
  0x2a   : > { %1883 = dma.hbm_to_vmem [thread:$0]  (!%p2247_p11), %s2484_s2, 160, %s145_s25, [#allocation6], %s2172_s5, %s2172_s5, %s2173_s6  }
  0x2b   : > { %s2270_s9 = sadd.s32 1, %s2166_s15   ;;  %s27_s11 = sadd.s32 1, %s2162_s14 }
  0x2c   : > { %s24_s10 = ssub.s32 %s2166_s15, %s2270_s9  ;;  %p34_p2 = scmp.ne.s32.totalorder %s2162_s14, %s2158_s13 }
  0x2d   : > { %p25_p1 = scmp.eq.s32.totalorder %s24_s10, 0  ;;  %p35_p6 = scmp.eq.s32.totalorder %s2166_s15, 0 }
  0x2e   : > { %p2494_p3 = scmp.eq.s32.totalorder %s2219_s16, 1  ;;  %p1894_p9 = scmp.lt.s32.totalorder %s2166_s15, 2 }
  0x2f   : > { %s2279_s17 = scalar_select %p25_p1, %s2162_s14, %s27_s11  }
  0x30   : > { %p36_p12 = por %p35_p6, %p34_p2  ;;  %p2283_p7 = por %p2494_p3, %p34_p2 }
  0x31   : > { %s158_s22 = sand.u32 1, %s2162_s14   ;;  %s1475_s24 = sshll.u32 %s2166_s15, 7 }
  0x32   : > { %s2495_s21 = scalar_select %p2283_p7, 1, 0 }
  0x33   : > { %s1474_s23 = sshll.u32 %s158_s22, 3  ;;  %s2293_s27 = scalar_lea.hbm %s2482_s0, %s1475_s24 }
  0x34   : > { %s162_s28 = scalar_lea.vmem [#allocation2], %s1474_s23  ;;  %p2295_p11 = pnand %p1894_p9, %p36_p12 }
  0x35   : > { %s169_s29 = sshll.u32 %s162_s28, 4  ;;  %s159_s4 = scalar_lea.sflag [#allocation3], %s158_s22  ;;  %s170_s29 = int_to_ptr.vmem [resolvable:$true] %s169_s29 }
  0x36   : > { %s2070_s5 = scalar_lea.hbm %s2293_s27, 128  ;;  %p2072_p0 = pneg %p2295_p11 }
  0x37   : > { %p2071_p13 = scmp.ne.s32.totalorder %s2293_s27, %s2070_s5  ;;  %s2075_s8 = scalar_lea.hbm %s2482_s0, 256 }
  0x38   : > { %p2076_p1 = scmp.lt.s32.totalorder %s2293_s27, %s2482_s0  ;;  %p2077_p2 = scmp.lt.s32.totalorder %s2075_s8, %s2070_s5 }
  0x39   : > { %p2073_p5 = pnand %p2072_p0, %p2071_p13 }
  0x3a   : > { %p2078_p6 = por %p2077_p2, %p2076_p1 }
  0x3b   : > { %p2074_p10 = pneg %p2073_p5 }
  0x3d   : > { %p2079_p12 = pnand %p2078_p6, %p2074_p10 }
  0x3f   : > { %2082 = shalt.err (!%p2079_p12)
}
  0x40   : > { %s2083_s23 = scalar_lea.vmem %s170_s29, 128  ;;  %s2174_s22 = smov [#allocation2]  }
  0x41   : > { %p2084_p3 = scmp.ne.s32.totalorder %s170_s29, %s2083_s23  ;;  %s2088_s24 = sshll.u32 %s2174_s22, 4  ;;  %s2089_s24 = int_to_ptr.vmem [resolvable:$false] %s2088_s24 }
  0x42   : > { %s2090_s25 = scalar_lea.vmem %s2089_s24, 256  ;;  %p2091_p13 = scmp.lt.s32.totalorder %s170_s29, %s2089_s24 }
  0x43   : > { %p2086_p9 = pnand %p2084_p3, %p2072_p0  ;;  %p2092_p5 = scmp.lt.s32.totalorder %s2090_s25, %s2083_s23 }
  0x45   : > { %p2087_p7 = pneg %p2086_p9  ;;  %p2093_p4 = por %p2092_p5, %p2091_p13 }
  0x47   : > { %p2094_p8 = pnand %p2093_p4, %p2087_p7 }
  0x49   : > { %2097 = shalt.err (!%p2094_p8)
}
  0x4a   : > { %1887 = dma.hbm_to_vmem [thread:$0]  (!%p2295_p11), %s2293_s27, 128, %s170_s29, %s159_s4  }
  0x4b   : > { %p2497_p10 = scmp.ne.s32.totalorder %s2492_s20, 0 }
  0x4c   : > { %s2316_s26 = sand.u32 (!%p2497_p10), 1, %s2158_s13   ;;  %p2498_p4 = scmp.ne.s32.totalorder (!%p2497_p10), %s2490_s18, 0 }
  0x4d   : > { %178 = sbr.rel (%p2497_p10) target bundleno = 2122 (0x84a), region = 32  ;;  %s1477_s28 = sshll.u32 (!%p2497_p10), %s2316_s26, 3 }
  0x4e   : > { %s181_s5 = scalar_lea.sflag (!%p2497_p10), [#allocation3], %s2316_s26  ;;  %s2322_s6 = scalar_lea.vmem (!%p2497_p10), [#allocation2], %s1477_s28 }
  0x52   : > { %2141 = dma.done.wait (%p2498_p4), %s181_s5, 128  }
  0x53   : > { %2143 = vsyncadd (%p2498_p4), %s181_s5, 4294967168  ;;  %p2499_p8 = scmp.eq.s32.totalorder %s2219_s16, 0 }
  0x55   : > { %2145 = dma.done.wait (%p2499_p8), [#allocation6], 10400   ;;  %p2500_p7 = pmov %p2499_p8 }
  0x56   : > { %v2175_v0 = vmov 0.0   ;;  %vm2176_vm0 = vmmov 0   ;;  %v1938_v1 = vld [vmem:[#allocation5 + $0x38] sm:$0xff]   ;;  %v1939_v2 = vld [vmem:[#allocation5 + $0x30] sm:$0xff]   ;;  %v1940_v3 = vld [vmem:[#allocation5 + $0x28] sm:$0xff]   ;;  %s1572_s18 = sshll.u32 %s2219_s16, 7 }
  0x57   : > { %2147 = vsyncadd (%p2500_p7), [#allocation6], 4294956896  ;;  %1665 = vmatprep.subr.bf16.mxu0 %v2175_v0  ;;  %1681 = vmatprep.mubr.msk.bf16.mxu0 %vm2176_vm0, %v2175_v0  ;;  %v1946_v4 = vld [vmem:[#allocation5 + $0x78] sm:$0xff]   ;;  %v1941_v5 = vld [vmem:[#allocation5 + $0x20] sm:$0xff]   ;;  %s214_s20 = scalar_lea.vmem [#allocation8], %s1477_s28  ;;  %s2439_s4 = scalar_lea.hbm %s2485_s3, %s1572_s18 }
  0x58   : > { %1685 = vmatprep.subr.bf16.mxu1 %v2175_v0  ;;  %1701 = vmatprep.mubr.msk.bf16.mxu1 %vm2176_vm0, %v2175_v0  ;;  %v1947_v6 = vld [vmem:[#allocation5 + $0x70] sm:$0xff]   ;;  %v1942_v7 = vld [vmem:[#allocation5 + $0x18] sm:$0xff]   ;;  %v1948_v8 = vld [vmem:[#allocation5 + $0x68] sm:$0xff]   ;;  %s1380_s27 = sshll.u32 %s214_s20, 4  ;;  %s1367_s16 = scalar_lea.sflag [#allocation4], %s2316_s26  ;;  %s2441_s27 = int_to_ptr.vmem [resolvable:$true] %s1380_s27 }
  0x59   : > { %1666 = vmatpush3.bf16.msra.mxu0 %v1938_v1  ;;  %1686 = vmatpush3.bf16.msra.mxu1 %v1946_v4  ;;  %v1943_v9 = vld [vmem:[#allocation5 + $0x10] sm:$0xff]   ;;  %v1949_v10 = vld [vmem:[#allocation5 + $0x60] sm:$0xff]   ;;  %v1944_v11 = vld [vmem:[#allocation5 + $0x8] sm:$0xff]   ;;  %s2098_s7 = scalar_lea.vmem %s2441_s27, 128  ;;  %p2501_p0 = scmp.ne.s32.totalorder %s2495_s21, 0 }
  0x5a   : > { %1667 = vmatprep.subr.bf16.mxu0 %v2175_v0  ;;  %1687 = vmatprep.subr.bf16.mxu1 %v2175_v0  ;;  %v1950_v12 = vld [vmem:[#allocation5 + $0x58] sm:$0xff]   ;;  %v1945_v13 = vld [vmem:[#allocation5] sm:$0xff]   ;;  %v1951_v15 = vld [vmem:[#allocation5 + $0x50] sm:$0xff]   ;;  %p2099_p11 = scmp.ne.s32.totalorder %s2441_s27, %s2098_s7  ;;  %s2177_s8 = smov [#allocation8]  }
  0x5b   : > { %v216_v14 = vld [vmem:[%s2322_s6] sm:$0xff]  ;;  %v1952_v17 = vld [vmem:[#allocation5 + $0x48] sm:$0xff]   ;;  %v1953_v18 = vld [vmem:[#allocation5 + $0x40] sm:$0xff]   ;;  %s2102_s10 = sshll.u32 %s2177_s8, 4  ;;  %s2103_s10 = int_to_ptr.vmem [resolvable:$false] %s2102_s10 }
  0x5c   : > { %v217_v16 = vpack.c.bf16 %v216_v14, %v216_v14  ;;  %v1954_v19 = vld [vmem:[#allocation5 + $0xb8] sm:$0xff]   ;;  %v1955_v20 = vld [vmem:[#allocation5 + $0xb0] sm:$0xff]   ;;  %v1956_v21 = vld [vmem:[#allocation5 + $0xa8] sm:$0xff]   ;;  %p2100_p1 = pnand %p2099_p11, %p2501_p0  ;;  %s2104_s11 = scalar_lea.vmem %s2103_s10, 256 }
  0x5d   : > { %1668 = vmatpush3.bf16.msra.mxu0 %v1939_v2  ;;  %1688 = vmatpush3.bf16.msra.mxu1 %v1947_v6  ;;  %v1957_v22 = vld [vmem:[#allocation5 + $0xa0] sm:$0xff]   ;;  %v1958_v23 = vld [vmem:[#allocation5 + $0x98] sm:$0xff]   ;;  %v1959_v24 = vld [vmem:[#allocation5 + $0x90] sm:$0xff]   ;;  %p2105_p6 = scmp.lt.s32.totalorder %s2441_s27, %s2103_s10  ;;  %p2106_p12 = scmp.lt.s32.totalorder %s2104_s11, %s2098_s7 }
  0x5e   : > { %1669 = vmatprep.subr.bf16.mxu0 %v2175_v0  ;;  %1689 = vmatprep.subr.bf16.mxu1 %v2175_v0  ;;  %v1481_v25 = vld [vmem:[#allocation7] ss:$0 sm:$0xff]  ;;  %v1960_v33 = vld [vmem:[#allocation5 + $0x88] sm:$0xff]   ;;  %v1962_v35 = vld [vmem:[#allocation5 + $0xf8] sm:$0xff]   ;;  %p2101_p2 = pneg %p2100_p1 }
  0x5f   : > { %v1961_v34 = vld [vmem:[#allocation5 + $0x80] sm:$0xff]   ;;  %v1963_v36 = vld [vmem:[#allocation5 + $0xf0] sm:$0xff]   ;;  %v1964_v37 = vld [vmem:[#allocation5 + $0xe8] sm:$0xff]   ;;  %p2107_p3 = por %p2106_p12, %p2105_p6 }
  0x60   : > { %v1965_v38 = vld [vmem:[#allocation5 + $0xe0] sm:$0xff]   ;;  %v1966_v39 = vld [vmem:[#allocation5 + $0xd8] sm:$0xff]   ;;  %v1967_v40 = vld [vmem:[#allocation5 + $0xd0] sm:$0xff]  }
  0x61   : > { %1670 = vmatpush3.bf16.msra.mxu0 %v1940_v3  ;;  %1690 = vmatpush3.bf16.msra.mxu1 %v1948_v8  ;;  %v1490_v41 = vld [vmem:[#allocation7 + $0x1] ss:$0 sm:$0xff]  ;;  %v1968_v49 = vld [vmem:[#allocation5 + $0xc8] sm:$0xff]   ;;  %v1970_v51 = vld [vmem:[#allocation5 + $0x138] sm:$0xff]   ;;  %p2108_p9 = pnand %p2107_p3, %p2101_p2 }
  0x62   : > { %1671 = vmatprep.subr.bf16.mxu0 %v2175_v0  ;;  %1691 = vmatprep.subr.bf16.mxu1 %v2175_v0  ;;  %v1969_v50 = vld [vmem:[#allocation5 + $0xc0] sm:$0xff]   ;;  %v1971_v52 = vld [vmem:[#allocation5 + $0x130] sm:$0xff]   ;;  %v1972_v53 = vld [vmem:[#allocation5 + $0x128] sm:$0xff]  }
  0x63   : > { %v1973_v54 = vld [vmem:[#allocation5 + $0x120] sm:$0xff]   ;;  %v1974_v55 = vld [vmem:[#allocation5 + $0x118] sm:$0xff]   ;;  %v1975_v56 = vld [vmem:[#allocation5 + $0x110] sm:$0xff]  }
  0x64   : > { %v1499_v57 = vld [vmem:[#allocation7 + $0x2] ss:$0 sm:$0xff]  ;;  %v1976_v2 = vld [vmem:[#allocation5 + $0x108] sm:$0xff]   ;;  %v1978_v4 = vld [vmem:[#allocation5 + $0x178] sm:$0xff]  }
  0x65   : > { %1672 = vmatpush3.bf16.msra.mxu0 %v1941_v5  ;;  %1692 = vmatpush3.bf16.msra.mxu1 %v1949_v10  ;;  %v1977_v3 = vld [vmem:[#allocation5 + $0x100] sm:$0xff]   ;;  %v1979_v5 = vld [vmem:[#allocation5 + $0x170] sm:$0xff]   ;;  %v1980_v6 = vld [vmem:[#allocation5 + $0x168] sm:$0xff]  }
  0x66   : > { %1673 = vmatprep.subr.bf16.mxu0 %v2175_v0  ;;  %1693 = vmatprep.subr.bf16.mxu1 %v2175_v0  ;;  %v1982_v8 = vld [vmem:[#allocation5 + $0x158] sm:$0xff]   ;;  %v1508_v10 = vld [vmem:[#allocation7 + $0x3] ss:$0 sm:$0xff] }
  0x69   : > { %1674 = vmatpush3.bf16.msra.mxu0 %v1942_v7  ;;  %1694 = vmatpush3.bf16.msra.mxu1 %v1950_v12  ;;  %v1981_v7 = vld [vmem:[#allocation5 + $0x160] sm:$0xff]  }
  0x6a   : > { %1675 = vmatprep.subr.bf16.mxu0 %v2175_v0  ;;  %1695 = vmatprep.subr.bf16.mxu1 %v2175_v0 }
  0x6d   : > { %1676 = vmatpush3.bf16.msra.mxu0 %v1943_v9  ;;  %1696 = vmatpush3.bf16.msra.mxu1 %v1951_v15  ;;  %v1983_v9 = vld [vmem:[#allocation5 + $0x150] sm:$0xff]  }
  0x6e   : > { %1677 = vmatprep.subr.bf16.mxu0 %v2175_v0  ;;  %1697 = vmatprep.subr.bf16.mxu1 %v2175_v0 }
  0x71   : > { %1678 = vmatpush3.bf16.msra.mxu0 %v1944_v11  ;;  %1698 = vmatpush3.bf16.msra.mxu1 %v1952_v17 }
  0x72   : > { %1679 = vmatprep.subr.bf16.mxu0 %v2175_v0  ;;  %1699 = vmatprep.subr.bf16.mxu1 %v2175_v0 }
  0x75   : > { %1680 = vmatpush3.bf16.msra.mxu0 %v1945_v13  ;;  %1700 = vmatpush3.bf16.msra.mxu1 %v1953_v18  ;;  %v1984_v18 = vld [vmem:[#allocation5 + $0x148] sm:$0xff]  }
  0x76   : > { %1705 = vmatprep.subr.bf16.mxu0 %v2175_v0  ;;  %1725 = vmatprep.subr.bf16.mxu1 %v2175_v0 }
  0x78   : > { %1682 = vmatmul.mubr.bf16.vlgmr.msra.gmra.mxu0 %v217_v16 }
  0x79   : > { %1721 = vmatprep.mubr.msk.bf16.mxu0 %vm2176_vm0, %v2175_v0  ;;  %1706 = vmatpush3.bf16.msra.mxu0 %v1954_v19  ;;  %v1985_v19 = vld [vmem:[#allocation5 + $0x140] sm:$0xff]  }
  0x7a   : > { %1707 = vmatprep.subr.bf16.mxu0 %v2175_v0 }
  0x7d   : > { %1708 = vmatpush3.bf16.msra.mxu0 %v1955_v20  ;;  %v1986_v20 = vld [vmem:[#allocation5 + $0x1b8] sm:$0xff]  }
  0x7e   : > { %1709 = vmatprep.subr.bf16.mxu0 %v2175_v0 }
  0x81   : > { %1710 = vmatpush3.bf16.msra.mxu0 %v1956_v21  ;;  %v1987_v21 = vld [vmem:[#allocation5 + $0x1b0] sm:$0xff]  }
  0x82   : > { %1711 = vmatprep.subr.bf16.mxu0 %v2175_v0 }
  0x85   : > { %1712 = vmatpush3.bf16.msra.mxu0 %v1957_v22  ;;  %v1988_v22 = vld [vmem:[#allocation5 + $0x1a8] sm:$0xff]  }
  0x86   : > { %1713 = vmatprep.subr.bf16.mxu0 %v2175_v0 }
  0x89   : > { %1714 = vmatpush3.bf16.msra.mxu0 %v1958_v23  ;;  %v1989_v23 = vld [vmem:[#allocation5 + $0x1a0] sm:$0xff]  }
  0x8a   : > { %1715 = vmatprep.subr.bf16.mxu0 %v2175_v0 }
  0x8d   : > { %1716 = vmatpush3.bf16.msra.mxu0 %v1959_v24  ;;  %v1990_v24 = vld [vmem:[#allocation5 + $0x198] sm:$0xff]  }
  0x8e   : > { %1717 = vmatprep.subr.bf16.mxu0 %v2175_v0 }
  0x91   : > { %1718 = vmatpush3.bf16.msra.mxu0 %v1960_v33 }
  0x92   : > { %1719 = vmatprep.subr.bf16.mxu0 %v2175_v0 }
  0x95   : > { %1720 = vmatpush3.bf16.msra.mxu0 %v1961_v34  ;;  %v1992_v34 = vld [vmem:[#allocation5 + $0x188] sm:$0xff]  }
  0x96   : > { %1745 = vmatprep.subr.bf16.mxu0 %v2175_v0 }
 0x138   : > { %v323_v26 = vpop.f32.mrf.mxu0 }
 0x139   : > { %v324_v27 = vadd.f32 %v1481_v25, %v323_v26  ;;  %v1991_v25 = vld [vmem:[#allocation5 + $0x190] sm:$0xff]   ;;  %v1517_v26 = vld [vmem:[#allocation7 + $0x4] ss:$0 sm:$0xff] }
 0x13a   : > { %v1683_v28 = vpop.f32.mrf.mxu0 }
 0x13b   : > { %v329_v29 = vmax.f32 %v324_v27, 0.0 }
 0x13c   : > { %v326_v30 = vpop.f32.mrf.mxu0 }
 0x13d   : > { %v330_v31 = vpack.c.bf16 %v329_v29, %v329_v29 }
 0x13e   : > { %v1684_v32 = vpop.f32.mrf.mxu0 }
 0x13f   : > { %1702 = vmatmul.mubr.bf16.vlgmr.msra.gmra.mxu1 %v330_v31 }
 0x140   : > { %1741 = vmatprep.mubr.msk.bf16.mxu1 %vm2176_vm0, %v2175_v0  ;;  %1726 = vmatpush3.bf16.msra.mxu1 %v1962_v35  ;;  %v1993_v35 = vld [vmem:[#allocation5 + $0x180] sm:$0xff]  }
 0x141   : > { %1727 = vmatprep.subr.bf16.mxu1 %v2175_v0 }
 0x144   : > { %1728 = vmatpush3.bf16.msra.mxu1 %v1963_v36  ;;  %v1994_v36 = vld [vmem:[#allocation5 + $0x1f8] sm:$0xff]  }
 0x145   : > { %1729 = vmatprep.subr.bf16.mxu1 %v2175_v0 }
 0x148   : > { %1730 = vmatpush3.bf16.msra.mxu1 %v1964_v37  ;;  %v1995_v37 = vld [vmem:[#allocation5 + $0x1f0] sm:$0xff]  }
 0x149   : > { %1731 = vmatprep.subr.bf16.mxu1 %v2175_v0 }
 0x14c   : > { %1732 = vmatpush3.bf16.msra.mxu1 %v1965_v38  ;;  %v1996_v38 = vld [vmem:[#allocation5 + $0x1e8] sm:$0xff]  }
 0x14d   : > { %1733 = vmatprep.subr.bf16.mxu1 %v2175_v0 }
 0x150   : > { %1734 = vmatpush3.bf16.msra.mxu1 %v1966_v39  ;;  %v1997_v39 = vld [vmem:[#allocation5 + $0x1e0] sm:$0xff]  }
 0x151   : > { %1735 = vmatprep.subr.bf16.mxu1 %v2175_v0 }
 0x154   : > { %1736 = vmatpush3.bf16.msra.mxu1 %v1967_v40  ;;  %v1998_v40 = vld [vmem:[#allocation5 + $0x1d8] sm:$0xff]  }
 0x155   : > { %1737 = vmatprep.subr.bf16.mxu1 %v2175_v0 }
 0x158   : > { %1738 = vmatpush3.bf16.msra.mxu1 %v1968_v49 }
 0x159   : > { %1739 = vmatprep.subr.bf16.mxu1 %v2175_v0 }
 0x15c   : > { %1740 = vmatpush3.bf16.msra.mxu1 %v1969_v50  ;;  %v2000_v50 = vld [vmem:[#allocation5 + $0x1c8] sm:$0xff]  }
 0x15d   : > { %1765 = vmatprep.subr.bf16.mxu1 %v2175_v0 }
 0x1ff   : > { %v438_v42 = vpop.f32.mrf.mxu1 }
 0x200   : > { %v439_v43 = vadd.f32 %v1490_v41, %v438_v42  ;;  %v1999_v41 = vld [vmem:[#allocation5 + $0x1d0] sm:$0xff]   ;;  %v1526_v42 = vld [vmem:[#allocation7 + $0x5] ss:$0 sm:$0xff] }
 0x201   : > { %v1703_v44 = vpop.f32.mrf.mxu1 }
 0x202   : > { %v444_v45 = vmax.f32 %v439_v43, 0.0 }
 0x203   : > { %v441_v46 = vpop.f32.mrf.mxu1 }
 0x204   : > { %v445_v47 = vpack.c.bf16 %v444_v45, %v444_v45 }
 0x205   : > { %v1704_v48 = vpop.f32.mrf.mxu1 }
 0x206   : > { %1722 = vmatmul.mubr.bf16.vlgmr.msra.gmra.mxu0 %v445_v47 }
 0x207   : > { %1761 = vmatprep.mubr.msk.bf16.mxu0 %vm2176_vm0, %v2175_v0  ;;  %1746 = vmatpush3.bf16.msra.mxu0 %v1970_v51  ;;  %v2001_v51 = vld [vmem:[#allocation5 + $0x1c0] sm:$0xff]  }
 0x208   : > { %1747 = vmatprep.subr.bf16.mxu0 %v2175_v0 }
 0x20b   : > { %1748 = vmatpush3.bf16.msra.mxu0 %v1971_v52  ;;  %v2002_v52 = vld [vmem:[#allocation5 + $0x238] sm:$0xff]  }
 0x20c   : > { %1749 = vmatprep.subr.bf16.mxu0 %v2175_v0 }
 0x20f   : > { %1750 = vmatpush3.bf16.msra.mxu0 %v1972_v53  ;;  %v2003_v53 = vld [vmem:[#allocation5 + $0x230] sm:$0xff]  }
 0x210   : > { %1751 = vmatprep.subr.bf16.mxu0 %v2175_v0 }
 0x213   : > { %1752 = vmatpush3.bf16.msra.mxu0 %v1973_v54  ;;  %v2004_v54 = vld [vmem:[#allocation5 + $0x228] sm:$0xff]  }
 0x214   : > { %1753 = vmatprep.subr.bf16.mxu0 %v2175_v0 }
 0x217   : > { %1754 = vmatpush3.bf16.msra.mxu0 %v1974_v55  ;;  %v2005_v55 = vld [vmem:[#allocation5 + $0x220] sm:$0xff]  }
 0x218   : > { %1755 = vmatprep.subr.bf16.mxu0 %v2175_v0 }
 0x21b   : > { %1756 = vmatpush3.bf16.msra.mxu0 %v1975_v56  ;;  %v2006_v56 = vld [vmem:[#allocation5 + $0x218] sm:$0xff]  }
 0x21c   : > { %1757 = vmatprep.subr.bf16.mxu0 %v2175_v0 }
 0x21f   : > { %1758 = vmatpush3.bf16.msra.mxu0 %v1976_v2 }
 0x220   : > { %1759 = vmatprep.subr.bf16.mxu0 %v2175_v0 }
 0x223   : > { %1760 = vmatpush3.bf16.msra.mxu0 %v1977_v3  ;;  %v2008_v3 = vld [vmem:[#allocation5 + $0x208] sm:$0xff]  }
 0x224   : > { %1785 = vmatprep.subr.bf16.mxu0 %v2175_v0 }
 0x2c6   : > { %v553_v58 = vpop.f32.mrf.mxu0 }
 0x2c7   : > { %v554_v59 = vadd.f32 %v1499_v57, %v553_v58  ;;  %v2007_v57 = vld [vmem:[#allocation5 + $0x210] sm:$0xff]   ;;  %v1535_v58 = vld [vmem:[#allocation7 + $0x6] ss:$0 sm:$0xff] }
 0x2c8   : > { %v1723_v60 = vpop.f32.mrf.mxu0 }
 0x2c9   : > { %v559_v61 = vmax.f32 %v554_v59, 0.0 }
 0x2ca   : > { %v556_v62 = vpop.f32.mrf.mxu0 }
 0x2cb   : > { %v560_v63 = vpack.c.bf16 %v559_v61, %v559_v61 }
 0x2cc   : > { %v1724_v1 = vpop.f32.mrf.mxu0 }
 0x2cd   : > { %1742 = vmatmul.mubr.bf16.vlgmr.msra.gmra.mxu1 %v560_v63 }
 0x2ce   : > { %1781 = vmatprep.mubr.msk.bf16.mxu1 %vm2176_vm0, %v2175_v0  ;;  %1766 = vmatpush3.bf16.msra.mxu1 %v1978_v4  ;;  %v2009_v4 = vld [vmem:[#allocation5 + $0x200] sm:$0xff]  }
 0x2cf   : > { %1767 = vmatprep.subr.bf16.mxu1 %v2175_v0 }
 0x2d2   : > { %1768 = vmatpush3.bf16.msra.mxu1 %v1979_v5  ;;  %v2010_v5 = vld [vmem:[#allocation5 + $0x278] sm:$0xff]  }
 0x2d3   : > { %1769 = vmatprep.subr.bf16.mxu1 %v2175_v0 }
 0x2d6   : > { %1770 = vmatpush3.bf16.msra.mxu1 %v1980_v6  ;;  %v2011_v6 = vld [vmem:[#allocation5 + $0x270] sm:$0xff]  }
 0x2d7   : > { %1771 = vmatprep.subr.bf16.mxu1 %v2175_v0 }
 0x2da   : > { %1772 = vmatpush3.bf16.msra.mxu1 %v1981_v7  ;;  %v2012_v7 = vld [vmem:[#allocation5 + $0x268] sm:$0xff]  }
 0x2db   : > { %1773 = vmatprep.subr.bf16.mxu1 %v2175_v0 }
 0x2de   : > { %1774 = vmatpush3.bf16.msra.mxu1 %v1982_v8  ;;  %v2013_v8 = vld [vmem:[#allocation5 + $0x260] sm:$0xff]  }
 0x2df   : > { %1775 = vmatprep.subr.bf16.mxu1 %v2175_v0 }
 0x2e2   : > { %1776 = vmatpush3.bf16.msra.mxu1 %v1983_v9  ;;  %v2014_v9 = vld [vmem:[#allocation5 + $0x258] sm:$0xff]  }
 0x2e3   : > { %1777 = vmatprep.subr.bf16.mxu1 %v2175_v0 }
 0x2e6   : > { %1778 = vmatpush3.bf16.msra.mxu1 %v1984_v18 }
 0x2e7   : > { %1779 = vmatprep.subr.bf16.mxu1 %v2175_v0 }
 0x2ea   : > { %1780 = vmatpush3.bf16.msra.mxu1 %v1985_v19  ;;  %v2016_v19 = vld [vmem:[#allocation5 + $0x248] sm:$0xff]  }
 0x2eb   : > { %1805 = vmatprep.subr.bf16.mxu1 %v2175_v0 }
 0x38d   : > { %v668_v11 = vpop.f32.mrf.mxu1 }
 0x38e   : > { %v669_v12 = vadd.f32 %v1508_v10, %v668_v11  ;;  %v2015_v10 = vld [vmem:[#allocation5 + $0x250] sm:$0xff]   ;;  %v1544_v11 = vld [vmem:[#allocation7 + $0x7] ss:$0 sm:$0xff] }
 0x38f   : > { %v1743_v13 = vpop.f32.mrf.mxu1 }
 0x390   : > { %v674_v14 = vmax.f32 %v669_v12, 0.0 }
 0x391   : > { %v671_v15 = vpop.f32.mrf.mxu1 }
 0x392   : > { %v675_v16 = vpack.c.bf16 %v674_v14, %v674_v14 }
 0x393   : > { %v1744_v17 = vpop.f32.mrf.mxu1 }
 0x394   : > { %1762 = vmatmul.mubr.bf16.vlgmr.msra.gmra.mxu0 %v675_v16 }
 0x395   : > { %1801 = vmatprep.mubr.msk.bf16.mxu0 %vm2176_vm0, %v2175_v0  ;;  %1786 = vmatpush3.bf16.msra.mxu0 %v1986_v20  ;;  %v2017_v20 = vld [vmem:[#allocation5 + $0x240] sm:$0xff]  }
 0x396   : > { %1787 = vmatprep.subr.bf16.mxu0 %v2175_v0 }
 0x399   : > { %1788 = vmatpush3.bf16.msra.mxu0 %v1987_v21  ;;  %v1553_v21 = vld [vmem:[#allocation7 + $0x8] ss:$0 sm:$0xff] }
 0x39a   : > { %1789 = vmatprep.subr.bf16.mxu0 %v2175_v0 }
 0x39d   : > { %1790 = vmatpush3.bf16.msra.mxu0 %v1988_v22 }
 0x39e   : > { %1791 = vmatprep.subr.bf16.mxu0 %v2175_v0 }
 0x3a1   : > { %1792 = vmatpush3.bf16.msra.mxu0 %v1989_v23 }
 0x3a2   : > { %1793 = vmatprep.subr.bf16.mxu0 %v2175_v0 }
 0x3a5   : > { %1794 = vmatpush3.bf16.msra.mxu0 %v1990_v24 }
 0x3a6   : > { %1795 = vmatprep.subr.bf16.mxu0 %v2175_v0 }
 0x3a9   : > { %1796 = vmatpush3.bf16.msra.mxu0 %v1991_v25 }
 0x3aa   : > { %1797 = vmatprep.subr.bf16.mxu0 %v2175_v0 }
 0x3ad   : > { %1798 = vmatpush3.bf16.msra.mxu0 %v1992_v34 }
 0x3ae   : > { %1799 = vmatprep.subr.bf16.mxu0 %v2175_v0 }
 0x3b1   : > { %1800 = vmatpush3.bf16.msra.mxu0 %v1993_v35 }
 0x3b2   : > { %1825 = vmatprep.subr.bf16.mxu0 %v2175_v0 }
 0x454   : > { %v783_v27 = vpop.f32.mrf.mxu0 }
 0x455   : > { %v784_v28 = vadd.f32 %v1517_v26, %v783_v27 }
 0x456   : > { %v1763_v29 = vpop.f32.mrf.mxu0 }
 0x457   : > { %v789_v30 = vmax.f32 %v784_v28, 0.0  ;;  %v1562_v29 = vld [vmem:[#allocation7 + $0x9] ss:$0 sm:$0xff] }
 0x458   : > { %v786_v31 = vpop.f32.mrf.mxu0 }
 0x459   : > { %v790_v32 = vpack.c.bf16 %v789_v30, %v789_v30 }
 0x45a   : > { %v1764_v33 = vpop.f32.mrf.mxu0 }
 0x45b   : > { %1782 = vmatmul.mubr.bf16.vlgmr.msra.gmra.mxu1 %v790_v32 }
 0x45c   : > { %1821 = vmatprep.mubr.msk.bf16.mxu1 %vm2176_vm0, %v2175_v0  ;;  %1806 = vmatpush3.bf16.msra.mxu1 %v1994_v36 }
 0x45d   : > { %1807 = vmatprep.subr.bf16.mxu1 %v2175_v0 }
 0x460   : > { %1808 = vmatpush3.bf16.msra.mxu1 %v1995_v37 }
 0x461   : > { %1809 = vmatprep.subr.bf16.mxu1 %v2175_v0 }
 0x464   : > { %1810 = vmatpush3.bf16.msra.mxu1 %v1996_v38 }
 0x465   : > { %1811 = vmatprep.subr.bf16.mxu1 %v2175_v0 }
 0x468   : > { %1812 = vmatpush3.bf16.msra.mxu1 %v1997_v39 }
 0x469   : > { %1813 = vmatprep.subr.bf16.mxu1 %v2175_v0 }
 0x46c   : > { %1814 = vmatpush3.bf16.msra.mxu1 %v1998_v40 }
 0x46d   : > { %1815 = vmatprep.subr.bf16.mxu1 %v2175_v0 }
 0x470   : > { %1816 = vmatpush3.bf16.msra.mxu1 %v1999_v41 }
 0x471   : > { %1817 = vmatprep.subr.bf16.mxu1 %v2175_v0 }
 0x474   : > { %1818 = vmatpush3.bf16.msra.mxu1 %v2000_v50 }
 0x475   : > { %1819 = vmatprep.subr.bf16.mxu1 %v2175_v0 }
 0x478   : > { %1820 = vmatpush3.bf16.msra.mxu1 %v2001_v51 }
 0x479   : > { %1845 = vmatprep.subr.bf16.mxu1 %v2175_v0 }
 0x51b   : > { %v898_v43 = vpop.f32.mrf.mxu1 }
 0x51c   : > { %v899_v44 = vadd.f32 %v1526_v42, %v898_v43 }
 0x51d   : > { %v1783_v45 = vpop.f32.mrf.mxu1 }
 0x51e   : > { %v904_v46 = vmax.f32 %v899_v44, 0.0 }
 0x51f   : > { %v901_v47 = vpop.f32.mrf.mxu1 }
 0x520   : > { %v905_v48 = vpack.c.bf16 %v904_v46, %v904_v46 }
 0x521   : > { %v1784_v49 = vpop.f32.mrf.mxu1 }
 0x522   : > { %1802 = vmatmul.mubr.bf16.vlgmr.msra.gmra.mxu0 %v905_v48 }
 0x523   : > { %1841 = vmatprep.mubr.msk.bf16.mxu0 %vm2176_vm0, %v2175_v0  ;;  %1826 = vmatpush3.bf16.msra.mxu0 %v2002_v52 }
 0x524   : > { %1827 = vmatprep.subr.bf16.mxu0 %v2175_v0 }
 0x527   : > { %1828 = vmatpush3.bf16.msra.mxu0 %v2003_v53 }
 0x528   : > { %1829 = vmatprep.subr.bf16.mxu0 %v2175_v0 }
 0x52b   : > { %1830 = vmatpush3.bf16.msra.mxu0 %v2004_v54 }
 0x52c   : > { %1831 = vmatprep.subr.bf16.mxu0 %v2175_v0 }
 0x52f   : > { %1832 = vmatpush3.bf16.msra.mxu0 %v2005_v55 }
 0x530   : > { %1833 = vmatprep.subr.bf16.mxu0 %v2175_v0 }
 0x533   : > { %1834 = vmatpush3.bf16.msra.mxu0 %v2006_v56 }
 0x534   : > { %1835 = vmatprep.subr.bf16.mxu0 %v2175_v0 }
 0x537   : > { %1836 = vmatpush3.bf16.msra.mxu0 %v2007_v57 }
 0x538   : > { %1837 = vmatprep.subr.bf16.mxu0 %v2175_v0 }
 0x53b   : > { %1838 = vmatpush3.bf16.msra.mxu0 %v2008_v3 }
 0x53c   : > { %1839 = vmatprep.subr.bf16.mxu0 %v2175_v0 }
 0x53f   : > { %1840 = vmatpush3.bf16.msra.mxu0 %v2009_v4 }
 0x5e2   : > { %v1013_v59 = vpop.f32.mrf.mxu0 }
 0x5e3   : > { %v1014_v60 = vadd.f32 %v1535_v58, %v1013_v59 }
 0x5e4   : > { %v1803_v61 = vpop.f32.mrf.mxu0 }
 0x5e5   : > { %v1019_v62 = vmax.f32 %v1014_v60, 0.0 }
 0x5e6   : > { %v1016_v63 = vpop.f32.mrf.mxu0 }
 0x5e7   : > { %v1020_v1 = vpack.c.bf16 %v1019_v62, %v1019_v62 }
 0x5e8   : > { %v1804_v2 = vpop.f32.mrf.mxu0 }
 0x5e9   : > { %1822 = vmatmul.mubr.bf16.vlgmr.msra.gmra.mxu1 %v1020_v1 }
 0x5ea   : > { %1861 = vmatprep.mubr.msk.bf16.mxu1 %vm2176_vm0, %v2175_v0  ;;  %1846 = vmatpush3.bf16.msra.mxu1 %v2010_v5 }
 0x5eb   : > { %1847 = vmatprep.subr.bf16.mxu1 %v2175_v0 }
 0x5ee   : > { %1848 = vmatpush3.bf16.msra.mxu1 %v2011_v6 }
 0x5ef   : > { %1849 = vmatprep.subr.bf16.mxu1 %v2175_v0 }
 0x5f2   : > { %1850 = vmatpush3.bf16.msra.mxu1 %v2012_v7 }
 0x5f3   : > { %1851 = vmatprep.subr.bf16.mxu1 %v2175_v0 }
 0x5f6   : > { %1852 = vmatpush3.bf16.msra.mxu1 %v2013_v8 }
 0x5f7   : > { %1853 = vmatprep.subr.bf16.mxu1 %v2175_v0 }
 0x5fa   : > { %1854 = vmatpush3.bf16.msra.mxu1 %v2014_v9 }
 0x5fb   : > { %1855 = vmatprep.subr.bf16.mxu1 %v2175_v0 }
 0x5fe   : > { %1856 = vmatpush3.bf16.msra.mxu1 %v2015_v10 }
 0x5ff   : > { %1857 = vmatprep.subr.bf16.mxu1 %v2175_v0 }
 0x602   : > { %1858 = vmatpush3.bf16.msra.mxu1 %v2016_v19 }
 0x603   : > { %1859 = vmatprep.subr.bf16.mxu1 %v2175_v0 }
 0x606   : > { %1860 = vmatpush3.bf16.msra.mxu1 %v2017_v20 }
 0x6a9   : > { %v1128_v12 = vpop.f32.mrf.mxu1 }
 0x6aa   : > { %v1129_v13 = vadd.f32 %v1544_v11, %v1128_v12 }
 0x6ab   : > { %v1823_v14 = vpop.f32.mrf.mxu1 }
 0x6ac   : > { %v1134_v15 = vmax.f32 %v1129_v13, 0.0 }
 0x6ad   : > { %v1131_v16 = vpop.f32.mrf.mxu1 }
 0x6ae   : > { %v1135_v17 = vpack.c.bf16 %v1134_v15, %v1134_v15 }
 0x6af   : > { %v1824_v18 = vpop.f32.mrf.mxu1 }
 0x6b0   : > { %1842 = vmatmul.mubr.bf16.vlgmr.msra.gmra.mxu0 %v1135_v17 }
 0x770   : > { %v1243_v22 = vpop.f32.mrf.mxu0 }
 0x771   : > { %v1244_v23 = vadd.f32 %v1553_v21, %v1243_v22 }
 0x772   : > { %v1843_v24 = vpop.f32.mrf.mxu0 }
 0x773   : > { %v1249_v25 = vmax.f32 %v1244_v23, 0.0 }
 0x774   : > { %v1246_v26 = vpop.f32.mrf.mxu0 }
 0x775   : > { %v1250_v27 = vpack.c.bf16 %v1249_v25, %v1249_v25 }
 0x776   : > { %v1844_v28 = vpop.f32.mrf.mxu0 }
 0x777   : > { %1862 = vmatmul.mubr.bf16.vlgmr.msra.gmra.mxu1 %v1250_v27 }
 0x837   : > { %v1358_v30 = vpop.f32.mrf.mxu1 }
 0x838   : > { %v1359_v0 = vadd.f32 %v1562_v29, %v1358_v30 }
 0x839   : > { %v1863_v31 = vpop.f32.mrf.mxu1 }
 0x83a   : > { %v1364_v32 = vmax.f32 %v1359_v0, 0.0 }
 0x83b   : > { %v1361_v33 = vpop.f32.mrf.mxu1 }
 0x83c   : > { %1365 = vst [vmem:[%s214_s20] sm:$0xff] %v1364_v32 }
 0x83d   : > { %v1864_v34 = vpop.f32.mrf.mxu1 }
 0x83e   : > { %2111 = shalt.err (!%p2108_p9)
}
 0x83f   : > { %s2112_s23 = scalar_lea.hbm %s2439_s4, 128  ;;  %s2116_s25 = scalar_lea.hbm %s2485_s3, 256 }
 0x840   : > { %p2113_p13 = scmp.ne.s32.totalorder %s2439_s4, %s2112_s23  ;;  %p2117_p4 = scmp.lt.s32.totalorder %s2439_s4, %s2485_s3 }
 0x841   : > { %p2118_p8 = scmp.lt.s32.totalorder %s2116_s25, %s2112_s23 }
 0x842   : > { %p2114_p5 = pnand %p2113_p13, %p2501_p0 }
 0x843   : > { %p2119_p7 = por %p2118_p8, %p2117_p4 }
 0x844   : > { %p2115_p10 = pneg %p2114_p5 }
 0x846   : > { %p2120_p11 = pnand %p2119_p7, %p2115_p10 }
 0x848   : > { %2123 = shalt.err (!%p2120_p11)
}
 0x849   : > { %1875 = dma.vmem_to_hbm [thread:$0]  (%p2501_p0), %s2441_s27, 128, %s2439_s4, %s1367_s16  }
 0x84a PF: > { %s1392_s5 = sand.u32 1, %s2154_s12   ;;  %p2502_p1 = scmp.ne.s32.totalorder %s2491_s19, 0 }
 0x84b   : > { %p2503_p2 = scmp.ge.s32.totalorder %s2166_s15, 2  ;;  %s1393_s6 = scalar_lea.sflag [#allocation4], %s1392_s5 }
 0x84d   : > { %p1889_p6 = pnand %p2503_p2, %p2502_p1 }
 0x84f   : > { %p1890_p12 = pneg %p1889_p6 }
 0x851   : > { %2149 = dma.done.wait (%p1890_p12), %s1393_s6, 128  }
 0x852   : > { %2151 = vsyncadd (%p1890_p12), %s1393_s6, 4294967168  ;;  %p17_p3 = scmp.ge.s32.totalorder %s2270_s9, 4   ;;  %s2504_s12 = smov %s2158_s13 }
 0x853   : > { %s2505_s13 = smov %s2162_s14  ;;  %s2506_s14 = smov %s2279_s17 }
 0x854   : > { %s2507_s15 = smov %s2270_s9  ;;  %19 = sbr.rel (!%p17_p3) target bundleno = 6 (0x6), region = 103 }
 0x859   :  { %1398 = vsyncpa [#allocation3], 1 }
 0x85a   :  { %1400 = vsyncpa [#allocation3 + $0x1], 1 }
 0x85b   :  { %1401 = vsyncpa [#allocation6], 1 }
 0x85c   :  { %1402 = vsyncpa [#allocation4], 1 }
 0x85d   :  { %1404 = vsyncpa [#allocation4 + $0x1], 1 }

</bundles_post_ra>
